<compile_context>
chip_gen: v7x
topology: tpu7x:2x2x1
jax: 0.10.0
libtpu: 0.0.40
codegen_flags: <defaults>
</compile_context>

<pallas_src>
import jax
import jax.numpy as jnp
from jax.experimental import pallas as pl
from jax.experimental.pallas import tpu as pltpu


def input_embedding_kernel(ids_ref, table_hbm, pe_ref, out_ref, emb_buf, sems):
    # ids_ref  : SMEM (batch * s_pad,)    int32  (scalar prefetch, flattened)
    # table_hbm: HBM  (vocab, d_pad)      f32    (memory_space=pl.ANY, raw ref)
    # pe_ref   : VMEM (seq_tile, d_pad)   f32    (per-tile positional encoding)
    # out_ref  : VMEM (1, seq_tile, d_pad) f32
    # emb_buf  : VMEM (2, seq_tile, d_pad) f32   (double-buffered gather target)
    # sems     : DMA semaphores, shape (2, seq_tile)
    b = pl.program_id(0)
    s = pl.program_id(1)
    num_s = pl.num_programs(1)
    ts = emb_buf.shape[1]

    def issue_gathers(tile_idx, slot):
        # One row-gather DMA (HBM -> VMEM) per token of the tile; all DMAs are
        # in flight before anything waits on them.
        base = b * (num_s * ts) + tile_idx * ts
        for t in range(ts):
            row = ids_ref[base + t]
            pltpu.make_async_copy(
                table_hbm.at[row], emb_buf.at[slot, t], sems.at[slot, t]
            ).start()

    # First seq-tile of this batch row: nothing is in flight yet -> start it.
    @pl.when(s == 0)
    def _():
        issue_gathers(0, 0)

    slot = s & 1

    # Prefetch the NEXT seq-tile's rows into the other slot before waiting on
    # the current one, so those DMAs overlap this step's add + output writeback.
    @pl.when(s + 1 < num_s)
    def _():
        issue_gathers(s + 1, 1 - slot)

    # Wait for the current tile's row gathers.
    for t in range(ts):
        pltpu.make_async_copy(
            table_hbm.at[0], emb_buf.at[slot, t], sems.at[slot, t]
        ).wait()

    # Fused positional-encoding add; single lane-dense (seq_tile, d_pad) store.
    out_ref[0] = emb_buf[slot] + pe_ref[...]


def make_positional_encoding(max_len: int, embedding_dim: int) -> jnp.ndarray:
    """Sinusoid encoding identical to the PyTorch PositionalEncoding __init__."""
    pos = jnp.arange(max_len, dtype=jnp.float32)[:, None]          # (max_len, 1)
    _2i = jnp.arange(0, embedding_dim, 2, dtype=jnp.float32)       # (D/2,)
    angle = pos / (10000.0 ** (_2i / embedding_dim))               # (max_len, D/2)
    enc = jnp.zeros((max_len, embedding_dim), dtype=jnp.float32)
    enc = enc.at[:, 0::2].set(jnp.sin(angle))
    enc = enc.at[:, 1::2].set(jnp.cos(angle))
    return enc


def input_embedding(ids: jnp.ndarray, table: jnp.ndarray, pos_enc_full: jnp.ndarray,
                    *, seq_tile: int = 32):
    """ids: (batch, seq) int32; table: (vocab, D) f32; pos_enc_full: (max_len, D) f32."""
    batch, seq = ids.shape
    vocab, d = table.shape

    # Guard the DMA gather against out-of-range token ids (cheap, host-side op).
    ids = jnp.clip(ids.astype(jnp.int32), 0, vocab - 1)

    # PositionalEncoding.forward: slice the first `seq` rows.
    pe = pos_enc_full[:seq].astype(table.dtype)

    # Lane-dense padding: embedding dim to a multiple of 128; seq tile is a
    # multiple of 8 sublanes and never larger than the padded sequence.
    d_pad = pl.cdiv(d, 128) * 128
    seq_tile = max(8, min(seq_tile, pl.cdiv(seq, 8) * 8))
    s_pad = pl.cdiv(seq, seq_tile) * seq_tile
    if d_pad != d:
        table = jnp.pad(table, ((0, 0), (0, d_pad - d)))
        pe = jnp.pad(pe, ((0, 0), (0, d_pad - d)))
    if s_pad != seq:
        pe = jnp.pad(pe, ((0, s_pad - seq), (0, 0)))
        ids = jnp.pad(ids, ((0, 0), (0, s_pad - seq)))  # padded tokens gather row 0; sliced away

    ids_flat = ids.reshape(-1)            # 1-D SMEM (avoids 2-D SMEM padding blow-up)
    num_s = s_pad // seq_tile
    grid = (batch, num_s)

    out = pl.pallas_call(
        input_embedding_kernel,
        out_shape=jax.ShapeDtypeStruct((batch, s_pad, d_pad), table.dtype),
        grid_spec=pltpu.PrefetchScalarGridSpec(
            num_scalar_prefetch=1,                               # ids -> SMEM
            grid=grid,
            in_specs=[
                pl.BlockSpec(memory_space=pl.ANY),               # table stays in HBM
                pl.BlockSpec((seq_tile, d_pad), lambda b, s, ids: (s, 0)),   # pe tile
            ],
            out_specs=pl.BlockSpec((1, seq_tile, d_pad), lambda b, s, ids: (b, s, 0)),
            scratch_shapes=[
                pltpu.VMEM((2, seq_tile, d_pad), table.dtype),   # double-buffered gathered rows
                pltpu.SemaphoreType.DMA((2, seq_tile)),          # one sem per in-flight row DMA
            ],
        ),
        compiler_params=pltpu.CompilerParams(
            # batch: megacore-parallel; seq: in-order (needed for cross-step prefetch)
            dimension_semantics=("parallel", "arbitrary")),
    )(ids_flat, table, pe)

    return out[:, :seq, :d]


if __name__ == "__main__":
    # Small shapes consistent with the module forward pass.
    vocab_size = 64
    embedding_dim = 128     # lane-dense embedding dim (multiple of 128)
    max_len = 16
    batch, seq = 2, 8

    key = jax.random.PRNGKey(0)
    k_ids, k_w = jax.random.split(key)

    # nn.Embedding default init is N(0, 1).
    table = jax.random.normal(k_w, (vocab_size, embedding_dim), dtype=jnp.float32)
    pos_enc_full = make_positional_encoding(max_len, embedding_dim)

    # Token-id inputs.
    ids = jax.random.randint(k_ids, (batch, seq), 0, vocab_size, dtype=jnp.int32)

    out = input_embedding(ids, table, pos_enc_full)
    out = jax.block_until_ready(out)

    # Pure-JAX reference (embedding lookup + broadcast pos-enc add).
    ref = table[ids] + pos_enc_full[:seq][None, :, :]
    assert out.shape == (batch, seq, embedding_dim)
    assert jnp.allclose(out, ref, atol=1e-5, rtol=1e-5)

    print("KERNEL_OK")
</pallas_src>

<mosaic_0001>
module attributes {stable_mosaic.version = 11 : i64} {
  func.func @input_embedding_kernel(%arg0: i32, %arg1: i32, %arg2: memref<16xi32, #tpu.memory_space<smem>>, %arg3: memref<64x128xf32, #tpu.memory_space<any>>, %arg4: memref<8x128xf32, #tpu.memory_space<vmem>>, %arg5: memref<1x8x128xf32, #tpu.memory_space<vmem>>, %arg6: memref<2x8x128xf32, #tpu.memory_space<vmem>>, %arg7: memref<2x8x!tpu.dma_semaphore, #tpu.memory_space<semaphore_mem>>) attributes {dimension_semantics = [#tpu.dimension_semantics<parallel>, #tpu.dimension_semantics<arbitrary>], iteration_bounds = array<i64: 2, 1>, scalar_prefetch = 1 : i64, scratch_operands = 2 : i64, tpu.core_type = #tpu.core_type<tc>, window_params = [{}, {transform_indices = @transform_1, window_bounds = array<i64: 8, 128>}, {transform_indices = @transform_2, window_bounds = array<i64: 1, 8, 128>}]} {
    %c0_i32 = arith.constant 0 : i32
    %0 = arith.cmpi eq, %arg1, %c0_i32 : i32
    %1 = arith.extui %0 : i1 to i32
    %c0_i32_0 = arith.constant 0 : i32
    %2 = arith.cmpi ne, %1, %c0_i32_0 : i32
    scf.if %2 {
      %c8_i32 = arith.constant 8 : i32
      %64 = arith.muli %arg0, %c8_i32 : i32
      %c0_i32_44 = arith.constant 0 : i32
      %65 = arith.addi %64, %c0_i32_44 : i32
      %c0_i32_45 = arith.constant 0 : i32
      %66 = arith.addi %65, %c0_i32_45 : i32
      %67 = arith.index_cast %66 : i32 to index
      %68 = memref.load %arg2[%67] : memref<16xi32, #tpu.memory_space<smem>>
      %c0_i32_46 = arith.constant 0 : i32
      %c0_i32_47 = arith.constant 0 : i32
      %c0_i32_48 = arith.constant 0 : i32
      %c0_i32_49 = arith.constant 0 : i32
      %c0_i32_50 = arith.constant 0 : i32
      %69 = tpu.memref_slice %arg3[%68, %c0_i32_50] : memref<64x128xf32, #tpu.memory_space<any>> -> memref<1x128xf32, #tpu.memory_space<any>>
      %70 = tpu.memref_squeeze %69 : memref<1x128xf32, #tpu.memory_space<any>> -> memref<128xf32, #tpu.memory_space<any>>
      %c0_i32_51 = arith.constant 0 : i32
      %71 = tpu.memref_slice %arg6[%c0_i32_46, %c0_i32_47, %c0_i32_51] : memref<2x8x128xf32, #tpu.memory_space<vmem>> -> memref<1x1x128xf32, #tpu.memory_space<vmem>>
      %72 = tpu.memref_squeeze %71 : memref<1x1x128xf32, #tpu.memory_space<vmem>> -> memref<128xf32, #tpu.memory_space<vmem>>
      %73 = tpu.memref_slice %arg7[%c0_i32_48, %c0_i32_49] : memref<2x8x!tpu.dma_semaphore, #tpu.memory_space<semaphore_mem>> -> memref<1x1x!tpu.dma_semaphore, #tpu.memory_space<semaphore_mem>>
      %74 = tpu.memref_squeeze %73 : memref<1x1x!tpu.dma_semaphore, #tpu.memory_space<semaphore_mem>> -> memref<!tpu.dma_semaphore, #tpu.memory_space<semaphore_mem>>
      tpu.enqueue_dma source(%70 : memref<128xf32, #tpu.memory_space<any>>) target(%72 : memref<128xf32, #tpu.memory_space<vmem>>) target_semaphore(%74 : memref<!tpu.dma_semaphore, #tpu.memory_space<semaphore_mem>>)
      %c1_i32_52 = arith.constant 1 : i32
      %75 = arith.addi %65, %c1_i32_52 : i32
      %76 = arith.index_cast %75 : i32 to index
      %77 = memref.load %arg2[%76] : memref<16xi32, #tpu.memory_space<smem>>
      %c0_i32_53 = arith.constant 0 : i32
      %c1_i32_54 = arith.constant 1 : i32
      %c0_i32_55 = arith.constant 0 : i32
      %c1_i32_56 = arith.constant 1 : i32
      %c0_i32_57 = arith.constant 0 : i32
      %78 = tpu.memref_slice %arg3[%77, %c0_i32_57] : memref<64x128xf32, #tpu.memory_space<any>> -> memref<1x128xf32, #tpu.memory_space<any>>
      %79 = tpu.memref_squeeze %78 : memref<1x128xf32, #tpu.memory_space<any>> -> memref<128xf32, #tpu.memory_space<any>>
      %c0_i32_58 = arith.constant 0 : i32
      %80 = tpu.memref_slice %arg6[%c0_i32_53, %c1_i32_54, %c0_i32_58] : memref<2x8x128xf32, #tpu.memory_space<vmem>> -> memref<1x1x128xf32, #tpu.memory_space<vmem>>
      %81 = tpu.memref_squeeze %80 : memref<1x1x128xf32, #tpu.memory_space<vmem>> -> memref<128xf32, #tpu.memory_space<vmem>>
      %82 = tpu.memref_slice %arg7[%c0_i32_55, %c1_i32_56] : memref<2x8x!tpu.dma_semaphore, #tpu.memory_space<semaphore_mem>> -> memref<1x1x!tpu.dma_semaphore, #tpu.memory_space<semaphore_mem>>
      %83 = tpu.memref_squeeze %82 : memref<1x1x!tpu.dma_semaphore, #tpu.memory_space<semaphore_mem>> -> memref<!tpu.dma_semaphore, #tpu.memory_space<semaphore_mem>>
      tpu.enqueue_dma source(%79 : memref<128xf32, #tpu.memory_space<any>>) target(%81 : memref<128xf32, #tpu.memory_space<vmem>>) target_semaphore(%83 : memref<!tpu.dma_semaphore, #tpu.memory_space<semaphore_mem>>)
      %c2_i32_59 = arith.constant 2 : i32
      %84 = arith.addi %65, %c2_i32_59 : i32
      %85 = arith.index_cast %84 : i32 to index
      %86 = memref.load %arg2[%85] : memref<16xi32, #tpu.memory_space<smem>>
      %c0_i32_60 = arith.constant 0 : i32
      %c2_i32_61 = arith.constant 2 : i32
      %c0_i32_62 = arith.constant 0 : i32
      %c2_i32_63 = arith.constant 2 : i32
      %c0_i32_64 = arith.constant 0 : i32
      %87 = tpu.memref_slice %arg3[%86, %c0_i32_64] : memref<64x128xf32, #tpu.memory_space<any>> -> memref<1x128xf32, #tpu.memory_space<any>>
      %88 = tpu.memref_squeeze %87 : memref<1x128xf32, #tpu.memory_space<any>> -> memref<128xf32, #tpu.memory_space<any>>
      %c0_i32_65 = arith.constant 0 : i32
      %89 = tpu.memref_slice %arg6[%c0_i32_60, %c2_i32_61, %c0_i32_65] : memref<2x8x128xf32, #tpu.memory_space<vmem>> -> memref<1x1x128xf32, #tpu.memory_space<vmem>>
      %90 = tpu.memref_squeeze %89 : memref<1x1x128xf32, #tpu.memory_space<vmem>> -> memref<128xf32, #tpu.memory_space<vmem>>
      %91 = tpu.memref_slice %arg7[%c0_i32_62, %c2_i32_63] : memref<2x8x!tpu.dma_semaphore, #tpu.memory_space<semaphore_mem>> -> memref<1x1x!tpu.dma_semaphore, #tpu.memory_space<semaphore_mem>>
      %92 = tpu.memref_squeeze %91 : memref<1x1x!tpu.dma_semaphore, #tpu.memory_space<semaphore_mem>> -> memref<!tpu.dma_semaphore, #tpu.memory_space<semaphore_mem>>
      tpu.enqueue_dma source(%88 : memref<128xf32, #tpu.memory_space<any>>) target(%90 : memref<128xf32, #tpu.memory_space<vmem>>) target_semaphore(%92 : memref<!tpu.dma_semaphore, #tpu.memory_space<semaphore_mem>>)
      %c3_i32_66 = arith.constant 3 : i32
      %93 = arith.addi %65, %c3_i32_66 : i32
      %94 = arith.index_cast %93 : i32 to index
      %95 = memref.load %arg2[%94] : memref<16xi32, #tpu.memory_space<smem>>
      %c0_i32_67 = arith.constant 0 : i32
      %c3_i32_68 = arith.constant 3 : i32
      %c0_i32_69 = arith.constant 0 : i32
      %c3_i32_70 = arith.constant 3 : i32
      %c0_i32_71 = arith.constant 0 : i32
      %96 = tpu.memref_slice %arg3[%95, %c0_i32_71] : memref<64x128xf32, #tpu.memory_space<any>> -> memref<1x128xf32, #tpu.memory_space<any>>
      %97 = tpu.memref_squeeze %96 : memref<1x128xf32, #tpu.memory_space<any>> -> memref<128xf32, #tpu.memory_space<any>>
      %c0_i32_72 = arith.constant 0 : i32
      %98 = tpu.memref_slice %arg6[%c0_i32_67, %c3_i32_68, %c0_i32_72] : memref<2x8x128xf32, #tpu.memory_space<vmem>> -> memref<1x1x128xf32, #tpu.memory_space<vmem>>
      %99 = tpu.memref_squeeze %98 : memref<1x1x128xf32, #tpu.memory_space<vmem>> -> memref<128xf32, #tpu.memory_space<vmem>>
      %100 = tpu.memref_slice %arg7[%c0_i32_69, %c3_i32_70] : memref<2x8x!tpu.dma_semaphore, #tpu.memory_space<semaphore_mem>> -> memref<1x1x!tpu.dma_semaphore, #tpu.memory_space<semaphore_mem>>
      %101 = tpu.memref_squeeze %100 : memref<1x1x!tpu.dma_semaphore, #tpu.memory_space<semaphore_mem>> -> memref<!tpu.dma_semaphore, #tpu.memory_space<semaphore_mem>>
      tpu.enqueue_dma source(%97 : memref<128xf32, #tpu.memory_space<any>>) target(%99 : memref<128xf32, #tpu.memory_space<vmem>>) target_semaphore(%101 : memref<!tpu.dma_semaphore, #tpu.memory_space<semaphore_mem>>)
      %c4_i32_73 = arith.constant 4 : i32
      %102 = arith.addi %65, %c4_i32_73 : i32
      %103 = arith.index_cast %102 : i32 to index
      %104 = memref.load %arg2[%103] : memref<16xi32, #tpu.memory_space<smem>>
      %c0_i32_74 = arith.constant 0 : i32
      %c4_i32_75 = arith.constant 4 : i32
      %c0_i32_76 = arith.constant 0 : i32
      %c4_i32_77 = arith.constant 4 : i32
      %c0_i32_78 = arith.constant 0 : i32
      %105 = tpu.memref_slice %arg3[%104, %c0_i32_78] : memref<64x128xf32, #tpu.memory_space<any>> -> memref<1x128xf32, #tpu.memory_space<any>>
      %106 = tpu.memref_squeeze %105 : memref<1x128xf32, #tpu.memory_space<any>> -> memref<128xf32, #tpu.memory_space<any>>
      %c0_i32_79 = arith.constant 0 : i32
      %107 = tpu.memref_slice %arg6[%c0_i32_74, %c4_i32_75, %c0_i32_79] : memref<2x8x128xf32, #tpu.memory_space<vmem>> -> memref<1x1x128xf32, #tpu.memory_space<vmem>>
      %108 = tpu.memref_squeeze %107 : memref<1x1x128xf32, #tpu.memory_space<vmem>> -> memref<128xf32, #tpu.memory_space<vmem>>
      %109 = tpu.memref_slice %arg7[%c0_i32_76, %c4_i32_77] : memref<2x8x!tpu.dma_semaphore, #tpu.memory_space<semaphore_mem>> -> memref<1x1x!tpu.dma_semaphore, #tpu.memory_space<semaphore_mem>>
      %110 = tpu.memref_squeeze %109 : memref<1x1x!tpu.dma_semaphore, #tpu.memory_space<semaphore_mem>> -> memref<!tpu.dma_semaphore, #tpu.memory_space<semaphore_mem>>
      tpu.enqueue_dma source(%106 : memref<128xf32, #tpu.memory_space<any>>) target(%108 : memref<128xf32, #tpu.memory_space<vmem>>) target_semaphore(%110 : memref<!tpu.dma_semaphore, #tpu.memory_space<semaphore_mem>>)
      %c5_i32_80 = arith.constant 5 : i32
      %111 = arith.addi %65, %c5_i32_80 : i32
      %112 = arith.index_cast %111 : i32 to index
      %113 = memref.load %arg2[%112] : memref<16xi32, #tpu.memory_space<smem>>
      %c0_i32_81 = arith.constant 0 : i32
      %c5_i32_82 = arith.constant 5 : i32
      %c0_i32_83 = arith.constant 0 : i32
      %c5_i32_84 = arith.constant 5 : i32
      %c0_i32_85 = arith.constant 0 : i32
      %114 = tpu.memref_slice %arg3[%113, %c0_i32_85] : memref<64x128xf32, #tpu.memory_space<any>> -> memref<1x128xf32, #tpu.memory_space<any>>
      %115 = tpu.memref_squeeze %114 : memref<1x128xf32, #tpu.memory_space<any>> -> memref<128xf32, #tpu.memory_space<any>>
      %c0_i32_86 = arith.constant 0 : i32
      %116 = tpu.memref_slice %arg6[%c0_i32_81, %c5_i32_82, %c0_i32_86] : memref<2x8x128xf32, #tpu.memory_space<vmem>> -> memref<1x1x128xf32, #tpu.memory_space<vmem>>
      %117 = tpu.memref_squeeze %116 : memref<1x1x128xf32, #tpu.memory_space<vmem>> -> memref<128xf32, #tpu.memory_space<vmem>>
      %118 = tpu.memref_slice %arg7[%c0_i32_83, %c5_i32_84] : memref<2x8x!tpu.dma_semaphore, #tpu.memory_space<semaphore_mem>> -> memref<1x1x!tpu.dma_semaphore, #tpu.memory_space<semaphore_mem>>
      %119 = tpu.memref_squeeze %118 : memref<1x1x!tpu.dma_semaphore, #tpu.memory_space<semaphore_mem>> -> memref<!tpu.dma_semaphore, #tpu.memory_space<semaphore_mem>>
      tpu.enqueue_dma source(%115 : memref<128xf32, #tpu.memory_space<any>>) target(%117 : memref<128xf32, #tpu.memory_space<vmem>>) target_semaphore(%119 : memref<!tpu.dma_semaphore, #tpu.memory_space<semaphore_mem>>)
      %c6_i32_87 = arith.constant 6 : i32
      %120 = arith.addi %65, %c6_i32_87 : i32
      %121 = arith.index_cast %120 : i32 to index
      %122 = memref.load %arg2[%121] : memref<16xi32, #tpu.memory_space<smem>>
      %c0_i32_88 = arith.constant 0 : i32
      %c6_i32_89 = arith.constant 6 : i32
      %c0_i32_90 = arith.constant 0 : i32
      %c6_i32_91 = arith.constant 6 : i32
      %c0_i32_92 = arith.constant 0 : i32
      %123 = tpu.memref_slice %arg3[%122, %c0_i32_92] : memref<64x128xf32, #tpu.memory_space<any>> -> memref<1x128xf32, #tpu.memory_space<any>>
      %124 = tpu.memref_squeeze %123 : memref<1x128xf32, #tpu.memory_space<any>> -> memref<128xf32, #tpu.memory_space<any>>
      %c0_i32_93 = arith.constant 0 : i32
      %125 = tpu.memref_slice %arg6[%c0_i32_88, %c6_i32_89, %c0_i32_93] : memref<2x8x128xf32, #tpu.memory_space<vmem>> -> memref<1x1x128xf32, #tpu.memory_space<vmem>>
      %126 = tpu.memref_squeeze %125 : memref<1x1x128xf32, #tpu.memory_space<vmem>> -> memref<128xf32, #tpu.memory_space<vmem>>
      %127 = tpu.memref_slice %arg7[%c0_i32_90, %c6_i32_91] : memref<2x8x!tpu.dma_semaphore, #tpu.memory_space<semaphore_mem>> -> memref<1x1x!tpu.dma_semaphore, #tpu.memory_space<semaphore_mem>>
      %128 = tpu.memref_squeeze %127 : memref<1x1x!tpu.dma_semaphore, #tpu.memory_space<semaphore_mem>> -> memref<!tpu.dma_semaphore, #tpu.memory_space<semaphore_mem>>
      tpu.enqueue_dma source(%124 : memref<128xf32, #tpu.memory_space<any>>) target(%126 : memref<128xf32, #tpu.memory_space<vmem>>) target_semaphore(%128 : memref<!tpu.dma_semaphore, #tpu.memory_space<semaphore_mem>>)
      %c7_i32_94 = arith.constant 7 : i32
      %129 = arith.addi %65, %c7_i32_94 : i32
      %130 = arith.index_cast %129 : i32 to index
      %131 = memref.load %arg2[%130] : memref<16xi32, #tpu.memory_space<smem>>
      %c0_i32_95 = arith.constant 0 : i32
      %c7_i32_96 = arith.constant 7 : i32
      %c0_i32_97 = arith.constant 0 : i32
      %c7_i32_98 = arith.constant 7 : i32
      %c0_i32_99 = arith.constant 0 : i32
      %132 = tpu.memref_slice %arg3[%131, %c0_i32_99] : memref<64x128xf32, #tpu.memory_space<any>> -> memref<1x128xf32, #tpu.memory_space<any>>
      %133 = tpu.memref_squeeze %132 : memref<1x128xf32, #tpu.memory_space<any>> -> memref<128xf32, #tpu.memory_space<any>>
      %c0_i32_100 = arith.constant 0 : i32
      %134 = tpu.memref_slice %arg6[%c0_i32_95, %c7_i32_96, %c0_i32_100] : memref<2x8x128xf32, #tpu.memory_space<vmem>> -> memref<1x1x128xf32, #tpu.memory_space<vmem>>
      %135 = tpu.memref_squeeze %134 : memref<1x1x128xf32, #tpu.memory_space<vmem>> -> memref<128xf32, #tpu.memory_space<vmem>>
      %136 = tpu.memref_slice %arg7[%c0_i32_97, %c7_i32_98] : memref<2x8x!tpu.dma_semaphore, #tpu.memory_space<semaphore_mem>> -> memref<1x1x!tpu.dma_semaphore, #tpu.memory_space<semaphore_mem>>
      %137 = tpu.memref_squeeze %136 : memref<1x1x!tpu.dma_semaphore, #tpu.memory_space<semaphore_mem>> -> memref<!tpu.dma_semaphore, #tpu.memory_space<semaphore_mem>>
      tpu.enqueue_dma source(%133 : memref<128xf32, #tpu.memory_space<any>>) target(%135 : memref<128xf32, #tpu.memory_space<vmem>>) target_semaphore(%137 : memref<!tpu.dma_semaphore, #tpu.memory_space<semaphore_mem>>)
    } else {
    }
    %c1_i32 = arith.constant 1 : i32
    %3 = arith.andi %arg1, %c1_i32 : i32
    %c1_i32_1 = arith.constant 1 : i32
    %4 = arith.addi %arg1, %c1_i32_1 : i32
    %c1_i32_2 = arith.constant 1 : i32
    %5 = arith.cmpi slt, %4, %c1_i32_2 : i32
    %6 = arith.extui %5 : i1 to i32
    %c0_i32_3 = arith.constant 0 : i32
    %7 = arith.cmpi ne, %6, %c0_i32_3 : i32
    scf.if %7 {
      %c1_i32_44 = arith.constant 1 : i32
      %64 = arith.addi %arg1, %c1_i32_44 : i32
      %c1_i32_45 = arith.constant 1 : i32
      %65 = arith.subi %c1_i32_45, %3 : i32
      %c8_i32 = arith.constant 8 : i32
      %66 = arith.muli %arg0, %c8_i32 : i32
      %c8_i32_46 = arith.constant 8 : i32
      %67 = arith.muli %64, %c8_i32_46 : i32
      %68 = arith.addi %66, %67 : i32
      %c0_i32_47 = arith.constant 0 : i32
      %69 = arith.addi %68, %c0_i32_47 : i32
      %70 = arith.index_cast %69 : i32 to index
      %71 = memref.load %arg2[%70] : memref<16xi32, #tpu.memory_space<smem>>
      %c0_i32_48 = arith.constant 0 : i32
      %c0_i32_49 = arith.constant 0 : i32
      %c0_i32_50 = arith.constant 0 : i32
      %72 = tpu.memref_slice %arg3[%71, %c0_i32_50] : memref<64x128xf32, #tpu.memory_space<any>> -> memref<1x128xf32, #tpu.memory_space<any>>
      %73 = tpu.memref_squeeze %72 : memref<1x128xf32, #tpu.memory_space<any>> -> memref<128xf32, #tpu.memory_space<any>>
      %c0_i32_51 = arith.constant 0 : i32
      %74 = tpu.memref_slice %arg6[%65, %c0_i32_48, %c0_i32_51] : memref<2x8x128xf32, #tpu.memory_space<vmem>> -> memref<1x1x128xf32, #tpu.memory_space<vmem>>
      %75 = tpu.memref_squeeze %74 : memref<1x1x128xf32, #tpu.memory_space<vmem>> -> memref<128xf32, #tpu.memory_space<vmem>>
      %76 = tpu.memref_slice %arg7[%65, %c0_i32_49] : memref<2x8x!tpu.dma_semaphore, #tpu.memory_space<semaphore_mem>> -> memref<1x1x!tpu.dma_semaphore, #tpu.memory_space<semaphore_mem>>
      %77 = tpu.memref_squeeze %76 : memref<1x1x!tpu.dma_semaphore, #tpu.memory_space<semaphore_mem>> -> memref<!tpu.dma_semaphore, #tpu.memory_space<semaphore_mem>>
      tpu.enqueue_dma source(%73 : memref<128xf32, #tpu.memory_space<any>>) target(%75 : memref<128xf32, #tpu.memory_space<vmem>>) target_semaphore(%77 : memref<!tpu.dma_semaphore, #tpu.memory_space<semaphore_mem>>)
      %c1_i32_52 = arith.constant 1 : i32
      %78 = arith.addi %68, %c1_i32_52 : i32
      %79 = arith.index_cast %78 : i32 to index
      %80 = memref.load %arg2[%79] : memref<16xi32, #tpu.memory_space<smem>>
      %c1_i32_53 = arith.constant 1 : i32
      %c1_i32_54 = arith.constant 1 : i32
      %c0_i32_55 = arith.constant 0 : i32
      %81 = tpu.memref_slice %arg3[%80, %c0_i32_55] : memref<64x128xf32, #tpu.memory_space<any>> -> memref<1x128xf32, #tpu.memory_space<any>>
      %82 = tpu.memref_squeeze %81 : memref<1x128xf32, #tpu.memory_space<any>> -> memref<128xf32, #tpu.memory_space<any>>
      %c0_i32_56 = arith.constant 0 : i32
      %83 = tpu.memref_slice %arg6[%65, %c1_i32_53, %c0_i32_56] : memref<2x8x128xf32, #tpu.memory_space<vmem>> -> memref<1x1x128xf32, #tpu.memory_space<vmem>>
      %84 = tpu.memref_squeeze %83 : memref<1x1x128xf32, #tpu.memory_space<vmem>> -> memref<128xf32, #tpu.memory_space<vmem>>
      %85 = tpu.memref_slice %arg7[%65, %c1_i32_54] : memref<2x8x!tpu.dma_semaphore, #tpu.memory_space<semaphore_mem>> -> memref<1x1x!tpu.dma_semaphore, #tpu.memory_space<semaphore_mem>>
      %86 = tpu.memref_squeeze %85 : memref<1x1x!tpu.dma_semaphore, #tpu.memory_space<semaphore_mem>> -> memref<!tpu.dma_semaphore, #tpu.memory_space<semaphore_mem>>
      tpu.enqueue_dma source(%82 : memref<128xf32, #tpu.memory_space<any>>) target(%84 : memref<128xf32, #tpu.memory_space<vmem>>) target_semaphore(%86 : memref<!tpu.dma_semaphore, #tpu.memory_space<semaphore_mem>>)
      %c2_i32_57 = arith.constant 2 : i32
      %87 = arith.addi %68, %c2_i32_57 : i32
      %88 = arith.index_cast %87 : i32 to index
      %89 = memref.load %arg2[%88] : memref<16xi32, #tpu.memory_space<smem>>
      %c2_i32_58 = arith.constant 2 : i32
      %c2_i32_59 = arith.constant 2 : i32
      %c0_i32_60 = arith.constant 0 : i32
      %90 = tpu.memref_slice %arg3[%89, %c0_i32_60] : memref<64x128xf32, #tpu.memory_space<any>> -> memref<1x128xf32, #tpu.memory_space<any>>
      %91 = tpu.memref_squeeze %90 : memref<1x128xf32, #tpu.memory_space<any>> -> memref<128xf32, #tpu.memory_space<any>>
      %c0_i32_61 = arith.constant 0 : i32
      %92 = tpu.memref_slice %arg6[%65, %c2_i32_58, %c0_i32_61] : memref<2x8x128xf32, #tpu.memory_space<vmem>> -> memref<1x1x128xf32, #tpu.memory_space<vmem>>
      %93 = tpu.memref_squeeze %92 : memref<1x1x128xf32, #tpu.memory_space<vmem>> -> memref<128xf32, #tpu.memory_space<vmem>>
      %94 = tpu.memref_slice %arg7[%65, %c2_i32_59] : memref<2x8x!tpu.dma_semaphore, #tpu.memory_space<semaphore_mem>> -> memref<1x1x!tpu.dma_semaphore, #tpu.memory_space<semaphore_mem>>
      %95 = tpu.memref_squeeze %94 : memref<1x1x!tpu.dma_semaphore, #tpu.memory_space<semaphore_mem>> -> memref<!tpu.dma_semaphore, #tpu.memory_space<semaphore_mem>>
      tpu.enqueue_dma source(%91 : memref<128xf32, #tpu.memory_space<any>>) target(%93 : memref<128xf32, #tpu.memory_space<vmem>>) target_semaphore(%95 : memref<!tpu.dma_semaphore, #tpu.memory_space<semaphore_mem>>)
      %c3_i32_62 = arith.constant 3 : i32
      %96 = arith.addi %68, %c3_i32_62 : i32
      %97 = arith.index_cast %96 : i32 to index
      %98 = memref.load %arg2[%97] : memref<16xi32, #tpu.memory_space<smem>>
      %c3_i32_63 = arith.constant 3 : i32
      %c3_i32_64 = arith.constant 3 : i32
      %c0_i32_65 = arith.constant 0 : i32
      %99 = tpu.memref_slice %arg3[%98, %c0_i32_65] : memref<64x128xf32, #tpu.memory_space<any>> -> memref<1x128xf32, #tpu.memory_space<any>>
      %100 = tpu.memref_squeeze %99 : memref<1x128xf32, #tpu.memory_space<any>> -> memref<128xf32, #tpu.memory_space<any>>
      %c0_i32_66 = arith.constant 0 : i32
      %101 = tpu.memref_slice %arg6[%65, %c3_i32_63, %c0_i32_66] : memref<2x8x128xf32, #tpu.memory_space<vmem>> -> memref<1x1x128xf32, #tpu.memory_space<vmem>>
      %102 = tpu.memref_squeeze %101 : memref<1x1x128xf32, #tpu.memory_space<vmem>> -> memref<128xf32, #tpu.memory_space<vmem>>
      %103 = tpu.memref_slice %arg7[%65, %c3_i32_64] : memref<2x8x!tpu.dma_semaphore, #tpu.memory_space<semaphore_mem>> -> memref<1x1x!tpu.dma_semaphore, #tpu.memory_space<semaphore_mem>>
      %104 = tpu.memref_squeeze %103 : memref<1x1x!tpu.dma_semaphore, #tpu.memory_space<semaphore_mem>> -> memref<!tpu.dma_semaphore, #tpu.memory_space<semaphore_mem>>
      tpu.enqueue_dma source(%100 : memref<128xf32, #tpu.memory_space<any>>) target(%102 : memref<128xf32, #tpu.memory_space<vmem>>) target_semaphore(%104 : memref<!tpu.dma_semaphore, #tpu.memory_space<semaphore_mem>>)
      %c4_i32_67 = arith.constant 4 : i32
      %105 = arith.addi %68, %c4_i32_67 : i32
      %106 = arith.index_cast %105 : i32 to index
      %107 = memref.load %arg2[%106] : memref<16xi32, #tpu.memory_space<smem>>
      %c4_i32_68 = arith.constant 4 : i32
      %c4_i32_69 = arith.constant 4 : i32
      %c0_i32_70 = arith.constant 0 : i32
      %108 = tpu.memref_slice %arg3[%107, %c0_i32_70] : memref<64x128xf32, #tpu.memory_space<any>> -> memref<1x128xf32, #tpu.memory_space<any>>
      %109 = tpu.memref_squeeze %108 : memref<1x128xf32, #tpu.memory_space<any>> -> memref<128xf32, #tpu.memory_space<any>>
      %c0_i32_71 = arith.constant 0 : i32
      %110 = tpu.memref_slice %arg6[%65, %c4_i32_68, %c0_i32_71] : memref<2x8x128xf32, #tpu.memory_space<vmem>> -> memref<1x1x128xf32, #tpu.memory_space<vmem>>
      %111 = tpu.memref_squeeze %110 : memref<1x1x128xf32, #tpu.memory_space<vmem>> -> memref<128xf32, #tpu.memory_space<vmem>>
      %112 = tpu.memref_slice %arg7[%65, %c4_i32_69] : memref<2x8x!tpu.dma_semaphore, #tpu.memory_space<semaphore_mem>> -> memref<1x1x!tpu.dma_semaphore, #tpu.memory_space<semaphore_mem>>
      %113 = tpu.memref_squeeze %112 : memref<1x1x!tpu.dma_semaphore, #tpu.memory_space<semaphore_mem>> -> memref<!tpu.dma_semaphore, #tpu.memory_space<semaphore_mem>>
      tpu.enqueue_dma source(%109 : memref<128xf32, #tpu.memory_space<any>>) target(%111 : memref<128xf32, #tpu.memory_space<vmem>>) target_semaphore(%113 : memref<!tpu.dma_semaphore, #tpu.memory_space<semaphore_mem>>)
      %c5_i32_72 = arith.constant 5 : i32
      %114 = arith.addi %68, %c5_i32_72 : i32
      %115 = arith.index_cast %114 : i32 to index
      %116 = memref.load %arg2[%115] : memref<16xi32, #tpu.memory_space<smem>>
      %c5_i32_73 = arith.constant 5 : i32
      %c5_i32_74 = arith.constant 5 : i32
      %c0_i32_75 = arith.constant 0 : i32
      %117 = tpu.memref_slice %arg3[%116, %c0_i32_75] : memref<64x128xf32, #tpu.memory_space<any>> -> memref<1x128xf32, #tpu.memory_space<any>>
      %118 = tpu.memref_squeeze %117 : memref<1x128xf32, #tpu.memory_space<any>> -> memref<128xf32, #tpu.memory_space<any>>
      %c0_i32_76 = arith.constant 0 : i32
      %119 = tpu.memref_slice %arg6[%65, %c5_i32_73, %c0_i32_76] : memref<2x8x128xf32, #tpu.memory_space<vmem>> -> memref<1x1x128xf32, #tpu.memory_space<vmem>>
      %120 = tpu.memref_squeeze %119 : memref<1x1x128xf32, #tpu.memory_space<vmem>> -> memref<128xf32, #tpu.memory_space<vmem>>
      %121 = tpu.memref_slice %arg7[%65, %c5_i32_74] : memref<2x8x!tpu.dma_semaphore, #tpu.memory_space<semaphore_mem>> -> memref<1x1x!tpu.dma_semaphore, #tpu.memory_space<semaphore_mem>>
      %122 = tpu.memref_squeeze %121 : memref<1x1x!tpu.dma_semaphore, #tpu.memory_space<semaphore_mem>> -> memref<!tpu.dma_semaphore, #tpu.memory_space<semaphore_mem>>
      tpu.enqueue_dma source(%118 : memref<128xf32, #tpu.memory_space<any>>) target(%120 : memref<128xf32, #tpu.memory_space<vmem>>) target_semaphore(%122 : memref<!tpu.dma_semaphore, #tpu.memory_space<semaphore_mem>>)
      %c6_i32_77 = arith.constant 6 : i32
      %123 = arith.addi %68, %c6_i32_77 : i32
      %124 = arith.index_cast %123 : i32 to index
      %125 = memref.load %arg2[%124] : memref<16xi32, #tpu.memory_space<smem>>
      %c6_i32_78 = arith.constant 6 : i32
      %c6_i32_79 = arith.constant 6 : i32
      %c0_i32_80 = arith.constant 0 : i32
      %126 = tpu.memref_slice %arg3[%125, %c0_i32_80] : memref<64x128xf32, #tpu.memory_space<any>> -> memref<1x128xf32, #tpu.memory_space<any>>
      %127 = tpu.memref_squeeze %126 : memref<1x128xf32, #tpu.memory_space<any>> -> memref<128xf32, #tpu.memory_space<any>>
      %c0_i32_81 = arith.constant 0 : i32
      %128 = tpu.memref_slice %arg6[%65, %c6_i32_78, %c0_i32_81] : memref<2x8x128xf32, #tpu.memory_space<vmem>> -> memref<1x1x128xf32, #tpu.memory_space<vmem>>
      %129 = tpu.memref_squeeze %128 : memref<1x1x128xf32, #tpu.memory_space<vmem>> -> memref<128xf32, #tpu.memory_space<vmem>>
      %130 = tpu.memref_slice %arg7[%65, %c6_i32_79] : memref<2x8x!tpu.dma_semaphore, #tpu.memory_space<semaphore_mem>> -> memref<1x1x!tpu.dma_semaphore, #tpu.memory_space<semaphore_mem>>
      %131 = tpu.memref_squeeze %130 : memref<1x1x!tpu.dma_semaphore, #tpu.memory_space<semaphore_mem>> -> memref<!tpu.dma_semaphore, #tpu.memory_space<semaphore_mem>>
      tpu.enqueue_dma source(%127 : memref<128xf32, #tpu.memory_space<any>>) target(%129 : memref<128xf32, #tpu.memory_space<vmem>>) target_semaphore(%131 : memref<!tpu.dma_semaphore, #tpu.memory_space<semaphore_mem>>)
      %c7_i32_82 = arith.constant 7 : i32
      %132 = arith.addi %68, %c7_i32_82 : i32
      %133 = arith.index_cast %132 : i32 to index
      %134 = memref.load %arg2[%133] : memref<16xi32, #tpu.memory_space<smem>>
      %c7_i32_83 = arith.constant 7 : i32
      %c7_i32_84 = arith.constant 7 : i32
      %c0_i32_85 = arith.constant 0 : i32
      %135 = tpu.memref_slice %arg3[%134, %c0_i32_85] : memref<64x128xf32, #tpu.memory_space<any>> -> memref<1x128xf32, #tpu.memory_space<any>>
      %136 = tpu.memref_squeeze %135 : memref<1x128xf32, #tpu.memory_space<any>> -> memref<128xf32, #tpu.memory_space<any>>
      %c0_i32_86 = arith.constant 0 : i32
      %137 = tpu.memref_slice %arg6[%65, %c7_i32_83, %c0_i32_86] : memref<2x8x128xf32, #tpu.memory_space<vmem>> -> memref<1x1x128xf32, #tpu.memory_space<vmem>>
      %138 = tpu.memref_squeeze %137 : memref<1x1x128xf32, #tpu.memory_space<vmem>> -> memref<128xf32, #tpu.memory_space<vmem>>
      %139 = tpu.memref_slice %arg7[%65, %c7_i32_84] : memref<2x8x!tpu.dma_semaphore, #tpu.memory_space<semaphore_mem>> -> memref<1x1x!tpu.dma_semaphore, #tpu.memory_space<semaphore_mem>>
      %140 = tpu.memref_squeeze %139 : memref<1x1x!tpu.dma_semaphore, #tpu.memory_space<semaphore_mem>> -> memref<!tpu.dma_semaphore, #tpu.memory_space<semaphore_mem>>
      tpu.enqueue_dma source(%136 : memref<128xf32, #tpu.memory_space<any>>) target(%138 : memref<128xf32, #tpu.memory_space<vmem>>) target_semaphore(%140 : memref<!tpu.dma_semaphore, #tpu.memory_space<semaphore_mem>>)
    } else {
    }
    %c0_i32_4 = arith.constant 0 : i32
    %c0_i32_5 = arith.constant 0 : i32
    %c0_i32_6 = arith.constant 0 : i32
    %c0_i32_7 = arith.constant 0 : i32
    %8 = tpu.memref_slice %arg3[%c0_i32_4, %c0_i32_7] : memref<64x128xf32, #tpu.memory_space<any>> -> memref<1x128xf32, #tpu.memory_space<any>>
    %9 = tpu.memref_squeeze %8 : memref<1x128xf32, #tpu.memory_space<any>> -> memref<128xf32, #tpu.memory_space<any>>
    %c0_i32_8 = arith.constant 0 : i32
    %10 = tpu.memref_slice %arg6[%3, %c0_i32_5, %c0_i32_8] : memref<2x8x128xf32, #tpu.memory_space<vmem>> -> memref<1x1x128xf32, #tpu.memory_space<vmem>>
    %11 = tpu.memref_squeeze %10 : memref<1x1x128xf32, #tpu.memory_space<vmem>> -> memref<128xf32, #tpu.memory_space<vmem>>
    %12 = tpu.memref_slice %arg7[%3, %c0_i32_6] : memref<2x8x!tpu.dma_semaphore, #tpu.memory_space<semaphore_mem>> -> memref<1x1x!tpu.dma_semaphore, #tpu.memory_space<semaphore_mem>>
    %13 = tpu.memref_squeeze %12 : memref<1x1x!tpu.dma_semaphore, #tpu.memory_space<semaphore_mem>> -> memref<!tpu.dma_semaphore, #tpu.memory_space<semaphore_mem>>
    tpu.wait_dma2 semaphore(%13 : memref<!tpu.dma_semaphore, #tpu.memory_space<semaphore_mem>>) src(%9 : memref<128xf32, #tpu.memory_space<any>>) dst(%11 : memref<128xf32, #tpu.memory_space<vmem>>)
    %c0_i32_9 = arith.constant 0 : i32
    %c1_i32_10 = arith.constant 1 : i32
    %c1_i32_11 = arith.constant 1 : i32
    %c0_i32_12 = arith.constant 0 : i32
    %14 = tpu.memref_slice %arg3[%c0_i32_9, %c0_i32_12] : memref<64x128xf32, #tpu.memory_space<any>> -> memref<1x128xf32, #tpu.memory_space<any>>
    %15 = tpu.memref_squeeze %14 : memref<1x128xf32, #tpu.memory_space<any>> -> memref<128xf32, #tpu.memory_space<any>>
    %c0_i32_13 = arith.constant 0 : i32
    %16 = tpu.memref_slice %arg6[%3, %c1_i32_10, %c0_i32_13] : memref<2x8x128xf32, #tpu.memory_space<vmem>> -> memref<1x1x128xf32, #tpu.memory_space<vmem>>
    %17 = tpu.memref_squeeze %16 : memref<1x1x128xf32, #tpu.memory_space<vmem>> -> memref<128xf32, #tpu.memory_space<vmem>>
    %18 = tpu.memref_slice %arg7[%3, %c1_i32_11] : memref<2x8x!tpu.dma_semaphore, #tpu.memory_space<semaphore_mem>> -> memref<1x1x!tpu.dma_semaphore, #tpu.memory_space<semaphore_mem>>
    %19 = tpu.memref_squeeze %18 : memref<1x1x!tpu.dma_semaphore, #tpu.memory_space<semaphore_mem>> -> memref<!tpu.dma_semaphore, #tpu.memory_space<semaphore_mem>>
    tpu.wait_dma2 semaphore(%19 : memref<!tpu.dma_semaphore, #tpu.memory_space<semaphore_mem>>) src(%15 : memref<128xf32, #tpu.memory_space<any>>) dst(%17 : memref<128xf32, #tpu.memory_space<vmem>>)
    %c0_i32_14 = arith.constant 0 : i32
    %c2_i32 = arith.constant 2 : i32
    %c2_i32_15 = arith.constant 2 : i32
    %c0_i32_16 = arith.constant 0 : i32
    %20 = tpu.memref_slice %arg3[%c0_i32_14, %c0_i32_16] : memref<64x128xf32, #tpu.memory_space<any>> -> memref<1x128xf32, #tpu.memory_space<any>>
    %21 = tpu.memref_squeeze %20 : memref<1x128xf32, #tpu.memory_space<any>> -> memref<128xf32, #tpu.memory_space<any>>
    %c0_i32_17 = arith.constant 0 : i32
    %22 = tpu.memref_slice %arg6[%3, %c2_i32, %c0_i32_17] : memref<2x8x128xf32, #tpu.memory_space<vmem>> -> memref<1x1x128xf32, #tpu.memory_space<vmem>>
    %23 = tpu.memref_squeeze %22 : memref<1x1x128xf32, #tpu.memory_space<vmem>> -> memref<128xf32, #tpu.memory_space<vmem>>
    %24 = tpu.memref_slice %arg7[%3, %c2_i32_15] : memref<2x8x!tpu.dma_semaphore, #tpu.memory_space<semaphore_mem>> -> memref<1x1x!tpu.dma_semaphore, #tpu.memory_space<semaphore_mem>>
    %25 = tpu.memref_squeeze %24 : memref<1x1x!tpu.dma_semaphore, #tpu.memory_space<semaphore_mem>> -> memref<!tpu.dma_semaphore, #tpu.memory_space<semaphore_mem>>
    tpu.wait_dma2 semaphore(%25 : memref<!tpu.dma_semaphore, #tpu.memory_space<semaphore_mem>>) src(%21 : memref<128xf32, #tpu.memory_space<any>>) dst(%23 : memref<128xf32, #tpu.memory_space<vmem>>)
    %c0_i32_18 = arith.constant 0 : i32
    %c3_i32 = arith.constant 3 : i32
    %c3_i32_19 = arith.constant 3 : i32
    %c0_i32_20 = arith.constant 0 : i32
    %26 = tpu.memref_slice %arg3[%c0_i32_18, %c0_i32_20] : memref<64x128xf32, #tpu.memory_space<any>> -> memref<1x128xf32, #tpu.memory_space<any>>
    %27 = tpu.memref_squeeze %26 : memref<1x128xf32, #tpu.memory_space<any>> -> memref<128xf32, #tpu.memory_space<any>>
    %c0_i32_21 = arith.constant 0 : i32
    %28 = tpu.memref_slice %arg6[%3, %c3_i32, %c0_i32_21] : memref<2x8x128xf32, #tpu.memory_space<vmem>> -> memref<1x1x128xf32, #tpu.memory_space<vmem>>
    %29 = tpu.memref_squeeze %28 : memref<1x1x128xf32, #tpu.memory_space<vmem>> -> memref<128xf32, #tpu.memory_space<vmem>>
    %30 = tpu.memref_slice %arg7[%3, %c3_i32_19] : memref<2x8x!tpu.dma_semaphore, #tpu.memory_space<semaphore_mem>> -> memref<1x1x!tpu.dma_semaphore, #tpu.memory_space<semaphore_mem>>
    %31 = tpu.memref_squeeze %30 : memref<1x1x!tpu.dma_semaphore, #tpu.memory_space<semaphore_mem>> -> memref<!tpu.dma_semaphore, #tpu.memory_space<semaphore_mem>>
    tpu.wait_dma2 semaphore(%31 : memref<!tpu.dma_semaphore, #tpu.memory_space<semaphore_mem>>) src(%27 : memref<128xf32, #tpu.memory_space<any>>) dst(%29 : memref<128xf32, #tpu.memory_space<vmem>>)
    %c0_i32_22 = arith.constant 0 : i32
    %c4_i32 = arith.constant 4 : i32
    %c4_i32_23 = arith.constant 4 : i32
    %c0_i32_24 = arith.constant 0 : i32
    %32 = tpu.memref_slice %arg3[%c0_i32_22, %c0_i32_24] : memref<64x128xf32, #tpu.memory_space<any>> -> memref<1x128xf32, #tpu.memory_space<any>>
    %33 = tpu.memref_squeeze %32 : memref<1x128xf32, #tpu.memory_space<any>> -> memref<128xf32, #tpu.memory_space<any>>
    %c0_i32_25 = arith.constant 0 : i32
    %34 = tpu.memref_slice %arg6[%3, %c4_i32, %c0_i32_25] : memref<2x8x128xf32, #tpu.memory_space<vmem>> -> memref<1x1x128xf32, #tpu.memory_space<vmem>>
    %35 = tpu.memref_squeeze %34 : memref<1x1x128xf32, #tpu.memory_space<vmem>> -> memref<128xf32, #tpu.memory_space<vmem>>
    %36 = tpu.memref_slice %arg7[%3, %c4_i32_23] : memref<2x8x!tpu.dma_semaphore, #tpu.memory_space<semaphore_mem>> -> memref<1x1x!tpu.dma_semaphore, #tpu.memory_space<semaphore_mem>>
    %37 = tpu.memref_squeeze %36 : memref<1x1x!tpu.dma_semaphore, #tpu.memory_space<semaphore_mem>> -> memref<!tpu.dma_semaphore, #tpu.memory_space<semaphore_mem>>
    tpu.wait_dma2 semaphore(%37 : memref<!tpu.dma_semaphore, #tpu.memory_space<semaphore_mem>>) src(%33 : memref<128xf32, #tpu.memory_space<any>>) dst(%35 : memref<128xf32, #tpu.memory_space<vmem>>)
    %c0_i32_26 = arith.constant 0 : i32
    %c5_i32 = arith.constant 5 : i32
    %c5_i32_27 = arith.constant 5 : i32
    %c0_i32_28 = arith.constant 0 : i32
    %38 = tpu.memref_slice %arg3[%c0_i32_26, %c0_i32_28] : memref<64x128xf32, #tpu.memory_space<any>> -> memref<1x128xf32, #tpu.memory_space<any>>
    %39 = tpu.memref_squeeze %38 : memref<1x128xf32, #tpu.memory_space<any>> -> memref<128xf32, #tpu.memory_space<any>>
    %c0_i32_29 = arith.constant 0 : i32
    %40 = tpu.memref_slice %arg6[%3, %c5_i32, %c0_i32_29] : memref<2x8x128xf32, #tpu.memory_space<vmem>> -> memref<1x1x128xf32, #tpu.memory_space<vmem>>
    %41 = tpu.memref_squeeze %40 : memref<1x1x128xf32, #tpu.memory_space<vmem>> -> memref<128xf32, #tpu.memory_space<vmem>>
    %42 = tpu.memref_slice %arg7[%3, %c5_i32_27] : memref<2x8x!tpu.dma_semaphore, #tpu.memory_space<semaphore_mem>> -> memref<1x1x!tpu.dma_semaphore, #tpu.memory_space<semaphore_mem>>
    %43 = tpu.memref_squeeze %42 : memref<1x1x!tpu.dma_semaphore, #tpu.memory_space<semaphore_mem>> -> memref<!tpu.dma_semaphore, #tpu.memory_space<semaphore_mem>>
    tpu.wait_dma2 semaphore(%43 : memref<!tpu.dma_semaphore, #tpu.memory_space<semaphore_mem>>) src(%39 : memref<128xf32, #tpu.memory_space<any>>) dst(%41 : memref<128xf32, #tpu.memory_space<vmem>>)
    %c0_i32_30 = arith.constant 0 : i32
    %c6_i32 = arith.constant 6 : i32
    %c6_i32_31 = arith.constant 6 : i32
    %c0_i32_32 = arith.constant 0 : i32
    %44 = tpu.memref_slice %arg3[%c0_i32_30, %c0_i32_32] : memref<64x128xf32, #tpu.memory_space<any>> -> memref<1x128xf32, #tpu.memory_space<any>>
    %45 = tpu.memref_squeeze %44 : memref<1x128xf32, #tpu.memory_space<any>> -> memref<128xf32, #tpu.memory_space<any>>
    %c0_i32_33 = arith.constant 0 : i32
    %46 = tpu.memref_slice %arg6[%3, %c6_i32, %c0_i32_33] : memref<2x8x128xf32, #tpu.memory_space<vmem>> -> memref<1x1x128xf32, #tpu.memory_space<vmem>>
    %47 = tpu.memref_squeeze %46 : memref<1x1x128xf32, #tpu.memory_space<vmem>> -> memref<128xf32, #tpu.memory_space<vmem>>
    %48 = tpu.memref_slice %arg7[%3, %c6_i32_31] : memref<2x8x!tpu.dma_semaphore, #tpu.memory_space<semaphore_mem>> -> memref<1x1x!tpu.dma_semaphore, #tpu.memory_space<semaphore_mem>>
    %49 = tpu.memref_squeeze %48 : memref<1x1x!tpu.dma_semaphore, #tpu.memory_space<semaphore_mem>> -> memref<!tpu.dma_semaphore, #tpu.memory_space<semaphore_mem>>
    tpu.wait_dma2 semaphore(%49 : memref<!tpu.dma_semaphore, #tpu.memory_space<semaphore_mem>>) src(%45 : memref<128xf32, #tpu.memory_space<any>>) dst(%47 : memref<128xf32, #tpu.memory_space<vmem>>)
    %c0_i32_34 = arith.constant 0 : i32
    %c7_i32 = arith.constant 7 : i32
    %c7_i32_35 = arith.constant 7 : i32
    %c0_i32_36 = arith.constant 0 : i32
    %50 = tpu.memref_slice %arg3[%c0_i32_34, %c0_i32_36] : memref<64x128xf32, #tpu.memory_space<any>> -> memref<1x128xf32, #tpu.memory_space<any>>
    %51 = tpu.memref_squeeze %50 : memref<1x128xf32, #tpu.memory_space<any>> -> memref<128xf32, #tpu.memory_space<any>>
    %c0_i32_37 = arith.constant 0 : i32
    %52 = tpu.memref_slice %arg6[%3, %c7_i32, %c0_i32_37] : memref<2x8x128xf32, #tpu.memory_space<vmem>> -> memref<1x1x128xf32, #tpu.memory_space<vmem>>
    %53 = tpu.memref_squeeze %52 : memref<1x1x128xf32, #tpu.memory_space<vmem>> -> memref<128xf32, #tpu.memory_space<vmem>>
    %54 = tpu.memref_slice %arg7[%3, %c7_i32_35] : memref<2x8x!tpu.dma_semaphore, #tpu.memory_space<semaphore_mem>> -> memref<1x1x!tpu.dma_semaphore, #tpu.memory_space<semaphore_mem>>
    %55 = tpu.memref_squeeze %54 : memref<1x1x!tpu.dma_semaphore, #tpu.memory_space<semaphore_mem>> -> memref<!tpu.dma_semaphore, #tpu.memory_space<semaphore_mem>>
    tpu.wait_dma2 semaphore(%55 : memref<!tpu.dma_semaphore, #tpu.memory_space<semaphore_mem>>) src(%51 : memref<128xf32, #tpu.memory_space<any>>) dst(%53 : memref<128xf32, #tpu.memory_space<vmem>>)
    %56 = arith.index_cast %3 : i32 to index
    %c0 = arith.constant 0 : index
    %c0_38 = arith.constant 0 : index
    %57 = vector.load %arg6[%56, %c0, %c0_38] : memref<2x8x128xf32, #tpu.memory_space<vmem>>, vector<1x8x128xf32>
    %58 = vector.shape_cast %57 : vector<1x8x128xf32> to vector<8x128xf32>
    %c0_39 = arith.constant 0 : index
    %c0_40 = arith.constant 0 : index
    %59 = vector.load %arg4[%c0_39, %c0_40] : memref<8x128xf32, #tpu.memory_space<vmem>>, vector<8x128xf32>
    %60 = arith.addf %58, %59 : vector<8x128xf32>
    %c0_41 = arith.constant 0 : index
    %c0_42 = arith.constant 0 : index
    %c0_43 = arith.constant 0 : index
    %61 = vector.load %arg5[%c0_41, %c0_42, %c0_43] : memref<1x8x128xf32, #tpu.memory_space<vmem>>, vector<1x8x128xf32>
    %62 = vector.shape_cast %61 : vector<1x8x128xf32> to vector<8x128xf32>
    %63 = vector.shape_cast %60 : vector<8x128xf32> to vector<1x8x128xf32>
    tpu.vector_store %arg5[%c0_41, %c0_42, %c0_43], %63 {strides = array<i32>} : memref<1x8x128xf32, #tpu.memory_space<vmem>>, vector<1x8x128xf32>,
    return
  }
  func.func @transform_1(%arg0: i32, %arg1: i32, %arg2: memref<16xi32, #tpu.memory_space<smem>>) -> (i32, i32) {
    %c0_i32 = arith.constant 0 : i32
    %c0_i32_0 = arith.constant 0 : i32
    return %arg1, %c0_i32 : i32, i32
  }
  func.func @transform_2(%arg0: i32, %arg1: i32, %arg2: memref<16xi32, #tpu.memory_space<smem>>) -> (i32, i32, i32) {
    %c0_i32 = arith.constant 0 : i32
    %c0_i32_0 = arith.constant 0 : i32
    return %arg0, %arg1, %c0_i32 : i32, i32, i32
  }
}

</mosaic_0001>

<bundles_post_ra>
// kernel: tpu_custom_call.1
= control target key start
LH: loop header
LB: loop body
LE: loop exit
PB: predicated region body
PF: predicated region fallthrough
CT: control target
= control target key end

     0   :  { %s1556_s0 = inlined_call_operand.hbm [shape: s32[16], index: 0, kind: input, shape index: {}]   ;;  %s1557_s1 = inlined_call_operand.hbm [shape: f32[64,128], index: 1, kind: input, shape index: {}]   ;;  %s1558_s2 = inlined_call_operand.hbm [shape: f32[8,128], index: 2, kind: input, shape index: {}]   ;;  %s1559_s3 = inlined_call_operand.hbm [shape: f32[2,8,128], index: 3, kind: output, shape index: {}]  }
   0x1   :  { %1567 = sst [smem:[#allocation57_spill]] %s1558_s2  ;;  %s897_s14 = scalar_lea.hbm %s1556_s0, 16 }
   0x2   :  { %p898_p0 = scmp.ne.s32.totalorder %s1556_s0, %s897_s14  ;;  %p901_p1 = scmp.lt.u32.totalorder %s897_s14, %s1556_s0 }
   0x4   :  { %p903_p2 = pnand %p901_p1, %p898_p0 }
   0x6   :  { %906 = shalt.err (!%p903_p2)  }
   0x7   :  { %s1229_s19 = smov [#allocation5]  }
   0x8   :  { %9 = dma.hbm_to_smem %s1556_s0, 16, %s1229_s19, [#allocation4] }
   0x9   :  { %1179 = dma.done.wait [#allocation4], 16 }
   0xa   :  { %1180 = vsyncadd [#allocation4], 4294967280 }
   0xb   :  { %11 = sfence }
   0xc   :  { %12 = vsyncpa [#allocation7], 0 }
   0xd   :  { %13 = vsyncpa [#allocation8], 0 }
   0xe   :  { %15 = vsyncpa [#allocation8 + $0x1], 0  ;;  %s1273_s22 = smov 0   ;;  %s1275_s23 = smov 0  }
   0xf   :  { %s1277_s24 = smov 0   ;;  %s1279_s25 = smov 0  }
  0x10   :  { %s1281_s26 = smov 0   ;;  %s1283_s27 = smov 0  }
  0x11 LB: > { %1568 = sst [smem:[#allocation55_spill]] %s1223_s26  ;;  %s762_s0 = sadd.s32 4294967295, %s1227_s27   ;;  %s1227_s27 = sphi %s1283_s27, %s21_s27   ;;  %s1223_s26 = sphi %s1281_s26, %s1582_s26   ;;  %s1219_s25 = sphi %s1279_s25, %s1581_s25   ;;  %s1215_s24 = sphi %s1277_s24, %s1585_s24   ;;  %s1211_s23 = sphi %s1275_s23, %s1584_s23   ;;  %s1207_s22 = sphi %s1273_s22, %s1583_s22  }
  0x12   : > { %s763_s28 = sadd.s32 4294967294, %s1227_s27   ;;  %s33_s29 = sadd.s32 1, %s1223_s26 }
  0x13   : > { %s68_s30 = sadd.s32 1, %s1215_s24  ;;  %p35_p3 = scmp.ge.s32.totalorder %s33_s29, 2 }
  0x14   : > { %p78_p4 = scmp.ne.s32.totalorder %s1215_s24, %s1211_s23  ;;  %p79_p5 = scmp.eq.s32.totalorder %s762_s0, 1 }
  0x15   : > { %p84_p6 = scmp.ne.s32.totalorder %s1211_s23, %s1207_s22  ;;  %s1587_s29 = smov (%p35_p3, %s33_s29), 0 }
  0x16   : > { %1569 = sst [smem:[#allocation56_spill]] %s1587_s29  ;;  %p1313_p7 = por %p79_p5, %p78_p4 }
  0x17   : > { %p85_p8 = scmp.eq.s32.totalorder %s763_s28, 1  ;;  %s63_s5 = ssub.s32 %s1223_s26, %s1587_s29 }
  0x18   : > { %s1570_s4 = scalar_select %p1313_p7, 1, 0 }
  0x19   : > { %p764_p9 = scmp.ge.s32.totalorder %s1227_s27, 1  ;;  %p66_p10 = scmp.eq.s32.totalorder %s63_s5, 0 }
  0x1a   : > { %p1320_p11 = por %p85_p8, %p84_p6  ;;  %p92_p12 = scmp.lt.s32.totalorder %s1227_s27, 3 }
  0x1b   : > { %s1326_s7 = scalar_select %p66_p10, %s1215_s24, %s68_s30  }
  0x1c   : > { %s1571_s6 = scalar_select %p1320_p11, 1, 0 }
  0x1d   : > { %p1328_p13 = pnand %p764_p9, %p92_p12  ;;  %p1332_p0 = scmp.eq.s32.totalorder %s762_s0, 0 }
  0x1e   : > { %s1230_s10 = smov [#allocation6]   ;;  %s1575_s2 = sld [smem:[#allocation57_spill]] }
  0x1f   : > { %s1572_s8 = scalar_select %p1328_p13, 1, 0 }
  0x20   : > { %s1573_s9 = scalar_select %p1332_p0, 1, 0 }
  0x21   : > { %p827_p1 = pneg %p1328_p13  ;;  %s107_s11 = sshll.u32 %s1230_s10, 4  ;;  %s108_s11 = int_to_ptr.vmem [resolvable:$true] %s107_s11 }
  0x23   : > { %p1340_p2 = pnand %p1332_p0, %p827_p1 }
  0x24   : > { %s907_s15 = scalar_lea.hbm %s1575_s2, 128 }
  0x25   : > { %p908_p3 = scmp.ne.s32.totalorder %s1575_s2, %s907_s15  ;;  %p909_p4 = pneg %p1340_p2 }
  0x26   : > { %p914_p8 = scmp.lt.u32.totalorder %s907_s15, %s1575_s2 }
  0x27   : > { %p910_p5 = pnand %p909_p4, %p908_p3 }
  0x29   : > { %p911_p6 = pneg %p910_p5 }
  0x2b   : > { %p916_p9 = pnand %p914_p8, %p911_p6 }
  0x2d   : > { %919 = shalt.err (!%p916_p9)
}
  0x2e   : > { %s920_s20 = scalar_lea.vmem %s108_s11, 128  ;;  %p928_p11 = scmp.lt.s32.totalorder %s108_s11, %s108_s11 }
  0x2f   : > { %p921_p10 = scmp.ne.s32.totalorder %s108_s11, %s920_s20  ;;  %p929_p7 = scmp.lt.s32.totalorder %s920_s20, %s920_s20 }
  0x31   : > { %p923_p12 = pnand %p921_p10, %p909_p4  ;;  %p930_p0 = por %p929_p7, %p928_p11 }
  0x33   : > { %p924_p1 = pneg %p923_p12 }
  0x35   : > { %p931_p13 = pnand %p930_p0, %p924_p1 }
  0x37   : > { %934 = shalt.err (!%p931_p13)
}
  0x38   : > { %830 = dma.hbm_to_vmem [thread:$0]  (!%p1340_p2), %s1575_s2, 128, %s108_s11, [#allocation7]  }
  0x39   : > { %p1576_p3 = scmp.ne.s32.totalorder %s1572_s8, 0 }
  0x3a   : > { %p1577_p5 = scmp.ne.s32.totalorder (!%p1576_p3), %s1573_s9, 0 }
  0x3b   : > { %120 = sbr.rel (%p1576_p3) target bundleno = 291 (0x123), region = 24 }
  0x42   : > { %1182 = dma.done.wait (%p1577_p5), [#allocation7], 128  }
  0x43   : > { %1184 = vsyncadd (%p1577_p5), [#allocation7], 4294967168  ;;  %s1564_s28 = sand.u32 1, %s1211_s23   ;;  %s1368_s30 = sshll.u32 %s1219_s25, 3 }
  0x44   : > { %s1372_s5 = sshll.u32 %s1564_s28, 3  ;;  %s140_s8 = sld [smem:[#allocation5 + %s1368_s30]] }
  0x45   : > { %s1231_s10 = smov [#allocation2]   ;;  %s154_s12 = sadd.s32 1, %s1368_s30 }
  0x46   : > { %s150_s11 = sshll.u32 %s1231_s10, 4  ;;  %s1378_s9 = sld [smem:[#allocation5 + %s154_s12]]  ;;  %s1376_s11 = int_to_ptr.vmem [resolvable:$true] %s150_s11 }
  0x47   : > { %s171_s13 = sadd.s32 2, %s1368_s30  ;;  %s1232_s14 = smov [#allocation2 + $0x1]  }
  0x48   : > { %s167_s15 = sshll.u32 %s1232_s14, 4  ;;  %s1381_s16 = sld [smem:[#allocation5 + %s171_s13]]  ;;  %s1383_s15 = int_to_ptr.vmem [resolvable:$true] %s167_s15 }
  0x49   : > { %s1391_s28 = scalar_lea.hbm %s1557_s1, 1024 }
  0x4a   : > { %s770_s17 = sshll.u32 %s140_s8, 4 }
  0x4b   : > { %s142_s20 = scalar_lea.hbm %s1557_s1, %s770_s17 }
  0x4c   : > { %s935_s21 = scalar_lea.hbm %s142_s20, 16  ;;  %p938_p11 = scmp.lt.u32.totalorder %s142_s20, %s1557_s1 }
  0x4d   : > { %p936_p7 = scmp.ne.s32.totalorder %s142_s20, %s935_s21  ;;  %p939_p13 = scmp.lt.u32.totalorder %s1391_s28, %s935_s21 }
  0x4e   : > { %p941_p2 = scmp.lt.u32.totalorder %s935_s21, %s142_s20 }
  0x4f   : > { %p940_p0 = por %p939_p13, %p938_p11 }
  0x51   : > { %p942_p4 = por %p941_p2, %p940_p0 }
  0x53   : > { %p943_p6 = pnand %p942_p4, %p936_p7 }
  0x55   : > { %946 = shalt.err (!%p943_p6)  }
  0x56   : > { %s947_s8 = scalar_lea.vmem %s1376_s11, 16  ;;  %s1400_s13 = scalar_lea.vmem %s1376_s11, 256 }
  0x57   : > { %p948_p8 = scmp.ne.s32.totalorder %s1376_s11, %s947_s8  ;;  %p952_p9 = scmp.lt.s32.totalorder %s1376_s11, %s1376_s11 }
  0x58   : > { %p953_p10 = scmp.lt.s32.totalorder %s1400_s13, %s947_s8 }
  0x5a   : > { %p954_p12 = por %p953_p10, %p952_p9 }
  0x5c   : > { %p955_p1 = pnand %p954_p12, %p948_p8 }
  0x5e   : > { %958 = shalt.err (!%p955_p1)  }
  0x5f   : > { %153 = dma.hbm_to_vmem [thread:$0]  %s142_s20, 16, %s1376_s11, [#allocation3] }
  0x60   : > { %s771_s2 = sshll.u32 %s1378_s9, 4  ;;  %s1233_s14 = smov [#allocation2 + $0x2]  }
  0x61   : > { %s184_s17 = sshll.u32 %s1233_s14, 4  ;;  %s157_s21 = scalar_lea.hbm %s1557_s1, %s771_s2  ;;  %s1410_s17 = int_to_ptr.vmem [resolvable:$true] %s184_s17 }
  0x62   : > { %s959_s0 = scalar_lea.hbm %s157_s21, 16  ;;  %p962_p5 = scmp.lt.u32.totalorder %s157_s21, %s1557_s1 }
  0x63   : > { %p960_p3 = scmp.ne.s32.totalorder %s157_s21, %s959_s0  ;;  %p963_p7 = scmp.lt.u32.totalorder %s1391_s28, %s959_s0 }
  0x64   : > { %p965_p13 = scmp.lt.u32.totalorder %s959_s0, %s157_s21 }
  0x65   : > { %p964_p11 = por %p963_p7, %p962_p5 }
  0x67   : > { %p966_p0 = por %p965_p13, %p964_p11 }
  0x69   : > { %p967_p2 = pnand %p966_p0, %p960_p3 }
  0x6b   : > { %970 = shalt.err (!%p967_p2)  }
  0x6c   : > { %s971_s9 = scalar_lea.vmem %s1383_s15, 16  ;;  %p976_p6 = scmp.lt.s32.totalorder %s1383_s15, %s1376_s11 }
  0x6d   : > { %p972_p4 = scmp.ne.s32.totalorder %s1383_s15, %s971_s9  ;;  %p977_p8 = scmp.lt.s32.totalorder %s1400_s13, %s971_s9 }
  0x6f   : > { %p978_p9 = por %p977_p8, %p976_p6 }
  0x71   : > { %p979_p10 = pnand %p978_p9, %p972_p4 }
  0x73   : > { %982 = shalt.err (!%p979_p10)  }
  0x74   : > { %170 = dma.hbm_to_vmem [thread:$0]  %s157_s21, 16, %s1383_s15, [#allocation3 + $0x1] }
  0x75   : > { %s772_s20 = sshll.u32 %s1381_s16, 4  ;;  %s188_s8 = sadd.s32 3, %s1368_s30 }
  0x76   : > { %s174_s18 = scalar_lea.hbm %s1557_s1, %s772_s20  ;;  %s1427_s19 = sld [smem:[#allocation5 + %s188_s8]] }
  0x77   : > { %s983_s0 = scalar_lea.hbm %s174_s18, 16  ;;  %p986_p1 = scmp.lt.u32.totalorder %s174_s18, %s1557_s1 }
  0x78   : > { %p984_p12 = scmp.ne.s32.totalorder %s174_s18, %s983_s0  ;;  %p987_p3 = scmp.lt.u32.totalorder %s1391_s28, %s983_s0 }
  0x79   : > { %p989_p7 = scmp.lt.u32.totalorder %s983_s0, %s174_s18 }
  0x7a   : > { %p988_p5 = por %p987_p3, %p986_p1 }
  0x7c   : > { %p990_p11 = por %p989_p7, %p988_p5 }
  0x7e   : > { %p991_p13 = pnand %p990_p11, %p984_p12 }
  0x80   : > { %994 = shalt.err (!%p991_p13)  }
  0x81   : > { %s995_s15 = scalar_lea.vmem %s1410_s17, 16  ;;  %p1000_p2 = scmp.lt.s32.totalorder %s1410_s17, %s1376_s11 }
  0x82   : > { %p996_p0 = scmp.ne.s32.totalorder %s1410_s17, %s995_s15  ;;  %p1001_p4 = scmp.lt.s32.totalorder %s1400_s13, %s995_s15 }
  0x84   : > { %p1002_p6 = por %p1001_p4, %p1000_p2 }
  0x86   : > { %p1003_p8 = pnand %p1002_p6, %p996_p0 }
  0x88   : > { %1006 = shalt.err (!%p1003_p8)  }
  0x89   : > { %187 = dma.hbm_to_vmem [thread:$0]  %s174_s18, 16, %s1410_s17, [#allocation3 + $0x2] }
  0x8a   : > { %s205_s16 = sadd.s32 4, %s1368_s30  ;;  %s1234_s21 = smov [#allocation2 + $0x3]  }
  0x8b   : > { %s201_s9 = sshll.u32 %s1234_s21, 4  ;;  %s206_s20 = sld [smem:[#allocation5 + %s205_s16]]  ;;  %s202_s9 = int_to_ptr.vmem [resolvable:$true] %s201_s9 }
  0x8c   : > { %s1235_s8 = smov [#allocation2 + $0x4]   ;;  %s222_s14 = sadd.s32 5, %s1368_s30 }
  0x8d   : > { %s218_s2 = sshll.u32 %s1235_s8, 4  ;;  %s773_s0 = sshll.u32 %s1427_s19, 4  ;;  %s1442_s2 = int_to_ptr.vmem [resolvable:$true] %s218_s2 }
  0x8e   : > { %s191_s15 = scalar_lea.hbm %s1557_s1, %s773_s0  ;;  %s1447_s29 = sld [smem:[#allocation5 + %s222_s14]] }
  0x8f   : > { %s1007_s26 = scalar_lea.hbm %s191_s15, 16  ;;  %p1010_p10 = scmp.lt.u32.totalorder %s191_s15, %s1557_s1 }
  0x90   : > { %p1008_p9 = scmp.ne.s32.totalorder %s191_s15, %s1007_s26  ;;  %p1011_p12 = scmp.lt.u32.totalorder %s1391_s28, %s1007_s26 }
  0x91   : > { %p1013_p3 = scmp.lt.u32.totalorder %s1007_s26, %s191_s15 }
  0x92   : > { %p1012_p1 = por %p1011_p12, %p1010_p10 }
  0x94   : > { %p1014_p5 = por %p1013_p3, %p1012_p1 }
  0x96   : > { %p1015_p7 = pnand %p1014_p5, %p1008_p9 }
  0x98   : > { %1018 = shalt.err (!%p1015_p7)  }
  0x99   : > { %s1019_s19 = scalar_lea.vmem %s202_s9, 16  ;;  %p1024_p13 = scmp.lt.s32.totalorder %s202_s9, %s1376_s11 }
  0x9a   : > { %p1020_p11 = scmp.ne.s32.totalorder %s202_s9, %s1019_s19  ;;  %p1025_p0 = scmp.lt.s32.totalorder %s1400_s13, %s1019_s19 }
  0x9c   : > { %p1026_p2 = por %p1025_p0, %p1024_p13 }
  0x9e   : > { %p1027_p4 = pnand %p1026_p2, %p1020_p11 }
  0xa0   : > { %1030 = shalt.err (!%p1027_p4)  }
  0xa1   : > { %204 = dma.hbm_to_vmem [thread:$0]  %s191_s15, 16, %s202_s9, [#allocation3 + $0x3] }
  0xa2   : > { %s774_s16 = sshll.u32 %s206_s20, 4  ;;  %s1236_s26 = smov [#allocation2 + $0x5]  }
  0xa3   : > { %s208_s14 = scalar_lea.hbm %s1557_s1, %s774_s16  ;;  %s235_s0 = sshll.u32 %s1236_s26, 4  ;;  %s236_s0 = int_to_ptr.vmem [resolvable:$true] %s235_s0 }
  0xa4   : > { %s1031_s10 = scalar_lea.hbm %s208_s14, 16  ;;  %p1034_p8 = scmp.lt.u32.totalorder %s208_s14, %s1557_s1 }
  0xa5   : > { %p1032_p6 = scmp.ne.s32.totalorder %s208_s14, %s1031_s10  ;;  %p1035_p9 = scmp.lt.u32.totalorder %s1391_s28, %s1031_s10 }
  0xa6   : > { %p1037_p12 = scmp.lt.u32.totalorder %s1031_s10, %s208_s14 }
  0xa7   : > { %p1036_p10 = por %p1035_p9, %p1034_p8 }
  0xa9   : > { %p1038_p1 = por %p1037_p12, %p1036_p10 }
  0xab   : > { %p1039_p3 = pnand %p1038_p1, %p1032_p6 }
  0xad   : > { %1042 = shalt.err (!%p1039_p3)  }
  0xae   : > { %s1043_s9 = scalar_lea.vmem %s1442_s2, 16  ;;  %p1048_p7 = scmp.lt.s32.totalorder %s1442_s2, %s1376_s11 }
  0xaf   : > { %p1044_p5 = scmp.ne.s32.totalorder %s1442_s2, %s1043_s9  ;;  %p1049_p11 = scmp.lt.s32.totalorder %s1400_s13, %s1043_s9 }
  0xb1   : > { %p1050_p13 = por %p1049_p11, %p1048_p7 }
  0xb3   : > { %p1051_p0 = pnand %p1050_p13, %p1044_p5 }
  0xb5   : > { %1054 = shalt.err (!%p1051_p0)  }
  0xb6   : > { %221 = dma.hbm_to_vmem [thread:$0]  %s208_s14, 16, %s1442_s2, [#allocation3 + $0x4] }
  0xb7   : > { %s239_s20 = sadd.s32 6, %s1368_s30  ;;  %s775_s15 = sshll.u32 %s1447_s29, 4 }
  0xb8   : > { %s240_s18 = sld [smem:[#allocation5 + %s239_s20]]  ;;  %s225_s21 = scalar_lea.hbm %s1557_s1, %s775_s15 }
  0xb9   : > { %s1055_s8 = scalar_lea.hbm %s225_s21, 16  ;;  %p1058_p4 = scmp.lt.u32.totalorder %s225_s21, %s1557_s1 }
  0xba   : > { %p1056_p2 = scmp.ne.s32.totalorder %s225_s21, %s1055_s8  ;;  %p1059_p6 = scmp.lt.u32.totalorder %s1391_s28, %s1055_s8 }
  0xbb   : > { %p1061_p9 = scmp.lt.u32.totalorder %s1055_s8, %s225_s21 }
  0xbc   : > { %p1060_p8 = por %p1059_p6, %p1058_p4 }
  0xbe   : > { %p1062_p10 = por %p1061_p9, %p1060_p8 }
  0xc0   : > { %p1063_p12 = pnand %p1062_p10, %p1056_p2 }
  0xc2   : > { %1066 = shalt.err (!%p1063_p12)  }
  0xc3   : > { %s1067_s2 = scalar_lea.vmem %s236_s0, 16  ;;  %p1072_p3 = scmp.lt.s32.totalorder %s236_s0, %s1376_s11 }
  0xc4   : > { %p1068_p1 = scmp.ne.s32.totalorder %s236_s0, %s1067_s2  ;;  %p1073_p5 = scmp.lt.s32.totalorder %s1400_s13, %s1067_s2 }
  0xc6   : > { %p1074_p7 = por %p1073_p5, %p1072_p3 }
  0xc8   : > { %p1075_p11 = pnand %p1074_p7, %p1068_p1 }
  0xca   : > { %1078 = shalt.err (!%p1075_p11)  }
  0xcb   : > { %238 = dma.hbm_to_vmem [thread:$0]  %s225_s21, 16, %s236_s0, [#allocation3 + $0x5] }
  0xcc   : > { %s1237_s29 = smov [#allocation2 + $0x6]   ;;  %s256_s12 = sadd.s32 7, %s1368_s30 }
  0xcd   : > { %s252_s14 = sshll.u32 %s1237_s29, 4  ;;  %s257_s17 = sld [smem:[#allocation5 + %s256_s12]]  ;;  %s253_s14 = int_to_ptr.vmem [resolvable:$true] %s252_s14 }
  0xce   : > { %s776_s9 = sshll.u32 %s240_s18, 4  ;;  %s1238_s20 = smov [#allocation2 + $0x7]  }
  0xcf   : > { %s269_s15 = sshll.u32 %s1238_s20, 4  ;;  %s242_s8 = scalar_lea.hbm %s1557_s1, %s776_s9  ;;  %s270_s15 = int_to_ptr.vmem [resolvable:$true] %s269_s15 }
  0xd0   : > { %s1079_s26 = scalar_lea.hbm %s242_s8, 16  ;;  %p1082_p0 = scmp.lt.u32.totalorder %s242_s8, %s1557_s1 }
  0xd1   : > { %p1080_p13 = scmp.ne.s32.totalorder %s242_s8, %s1079_s26  ;;  %p1083_p2 = scmp.lt.u32.totalorder %s1391_s28, %s1079_s26 }
  0xd2   : > { %p1085_p6 = scmp.lt.u32.totalorder %s1079_s26, %s242_s8 }
  0xd3   : > { %p1084_p4 = por %p1083_p2, %p1082_p0 }
  0xd5   : > { %p1086_p8 = por %p1085_p6, %p1084_p4 }
  0xd7   : > { %p1087_p9 = pnand %p1086_p8, %p1080_p13 }
  0xd9   : > { %1090 = shalt.err (!%p1087_p9)  }
  0xda   : > { %s1091_s30 = scalar_lea.vmem %s253_s14, 16  ;;  %p1096_p12 = scmp.lt.s32.totalorder %s253_s14, %s1376_s11 }
  0xdb   : > { %p1092_p10 = scmp.ne.s32.totalorder %s253_s14, %s1091_s30  ;;  %p1097_p1 = scmp.lt.s32.totalorder %s1400_s13, %s1091_s30 }
  0xdd   : > { %p1098_p3 = por %p1097_p1, %p1096_p12 }
  0xdf   : > { %p1099_p5 = pnand %p1098_p3, %p1092_p10 }
  0xe1   : > { %1102 = shalt.err (!%p1099_p5)  }
  0xe2   : > { %255 = dma.hbm_to_vmem [thread:$0]  %s242_s8, 16, %s253_s14, [#allocation3 + $0x6] }
  0xe3   : > { %s777_s0 = sshll.u32 %s257_s17, 4 }
  0xe4   : > { %s259_s29 = scalar_lea.hbm %s1557_s1, %s777_s0 }
  0xe5   : > { %s1103_s12 = scalar_lea.hbm %s259_s29, 16  ;;  %p1106_p11 = scmp.lt.u32.totalorder %s259_s29, %s1557_s1 }
  0xe6   : > { %p1104_p7 = scmp.ne.s32.totalorder %s259_s29, %s1103_s12  ;;  %p1107_p13 = scmp.lt.u32.totalorder %s1391_s28, %s1103_s12 }
  0xe7   : > { %p1109_p2 = scmp.lt.u32.totalorder %s1103_s12, %s259_s29 }
  0xe8   : > { %p1108_p0 = por %p1107_p13, %p1106_p11 }
  0xea   : > { %p1110_p4 = por %p1109_p2, %p1108_p0 }
  0xec   : > { %p1111_p6 = pnand %p1110_p4, %p1104_p7 }
  0xee   : > { %1114 = shalt.err (!%p1111_p6)  }
  0xef   : > { %s1115_s14 = scalar_lea.vmem %s270_s15, 16  ;;  %p1120_p9 = scmp.lt.s32.totalorder %s270_s15, %s1376_s11 }
  0xf0   : > { %p1116_p8 = scmp.ne.s32.totalorder %s270_s15, %s1115_s14  ;;  %p1121_p10 = scmp.lt.s32.totalorder %s1400_s13, %s1115_s14 }
  0xf2   : > { %p1122_p12 = por %p1121_p10, %p1120_p9 }
  0xf4   : > { %p1123_p1 = pnand %p1122_p12, %p1116_p8 }
  0xf6   : > { %1126 = shalt.err (!%p1123_p1)  }
  0xf7   : > { %272 = dma.hbm_to_vmem [thread:$0]  %s259_s29, 16, %s270_s15, [#allocation3 + $0x7] }
  0xf8   : > { %s134_s17 = scalar_lea.vmem [#allocation9], %s1372_s5 }
  0xf9   : > { %1185 = dma.done.wait [#allocation3], 16 }
  0xfa   : > { %1186 = vsyncadd [#allocation3], 4294967280  ;;  %s1239_s28 = smov [#allocation3]  }
  0xfb   : > { %s700_s19 = scalar_lea.sflag %s1239_s28, 1 }
  0xfc   : > { %1187 = dma.done.wait %s700_s19, 16 }
  0xfd   : > { %1188 = vsyncadd %s700_s19, 4294967280  ;;  %s703_s16 = scalar_lea.sflag %s1239_s28, 2 }
  0xfe   : > { %1189 = dma.done.wait %s703_s16, 16 }
  0xff   : > { %1190 = vsyncadd %s703_s16, 4294967280  ;;  %s706_s8 = scalar_lea.sflag %s1239_s28, 3 }
 0x100   : > { %1191 = dma.done.wait %s706_s8, 16 }
 0x101   : > { %1192 = vsyncadd %s706_s8, 4294967280  ;;  %s709_s11 = scalar_lea.sflag %s1239_s28, 4 }
 0x102   : > { %1193 = dma.done.wait %s709_s11, 16 }
 0x103   : > { %1194 = vsyncadd %s709_s11, 4294967280  ;;  %s712_s13 = scalar_lea.sflag %s1239_s28, 5 }
 0x104   : > { %1195 = dma.done.wait %s712_s13, 16 }
 0x105   : > { %1196 = vsyncadd %s712_s13, 4294967280  ;;  %s715_s15 = scalar_lea.sflag %s1239_s28, 6 }
 0x106   : > { %1197 = dma.done.wait %s715_s15, 16 }
 0x107   : > { %1198 = vsyncadd %s715_s15, 4294967280  ;;  %s718_s26 = scalar_lea.sflag %s1239_s28, 7 }
 0x108   : > { %1199 = dma.done.wait %s718_s26, 16 }
 0x109   : > { %1200 = vsyncadd %s718_s26, 4294967280  ;;  %s802_s10 = sshll.u32 %s1219_s25, 7  ;;  %s478_s2 = sshll.u32 %s134_s17, 4  ;;  %v459_v0 = vld [vmem:[#allocation2] sm:$0xff]  ;;  %v460_v1 = vld [vmem:[#allocation6] sm:$0xff]  ;;  %s1507_s2 = int_to_ptr.vmem [resolvable:$true] %s478_s2 }
 0x10a   : > { %v461_v2 = vadd.f32 %v460_v1, %v459_v0  ;;  %s1505_s18 = scalar_lea.hbm %s1559_s3, %s802_s10  ;;  %s1578_s21 = sand.u32 1, %s1211_s23  }
 0x10b   : > { %s464_s29 = scalar_lea.sflag [#allocation8], %s1578_s21  ;;  %s1127_s25 = scalar_lea.vmem %s1507_s2, 128 }
 0x10c   : > { %462 = vst [vmem:[%s134_s17] sm:$0xff] %v461_v2  ;;  %p1128_p3 = scmp.ne.s32.totalorder %s1507_s2, %s1127_s25  ;;  %p1579_p5 = scmp.ne.s32.totalorder %s1570_s4, 0 }
 0x10d   : > { %s1240_s12 = smov [#allocation9]  }
 0x10e   : > { %p1129_p7 = pnand %p1128_p3, %p1579_p5  ;;  %s1131_s9 = sshll.u32 %s1240_s12, 4  ;;  %s1132_s9 = int_to_ptr.vmem [resolvable:$false] %s1131_s9 }
 0x10f   : > { %s1133_s20 = scalar_lea.vmem %s1132_s9, 256  ;;  %p1134_p13 = scmp.lt.s32.totalorder %s1507_s2, %s1132_s9 }
 0x110   : > { %p1130_p11 = pneg %p1129_p7  ;;  %p1135_p0 = scmp.lt.s32.totalorder %s1133_s20, %s1127_s25 }
 0x112   : > { %p1136_p2 = por %p1135_p0, %p1134_p13 }
 0x114   : > { %p1137_p4 = pnand %p1136_p2, %p1130_p11 }
 0x116   : > { %1140 = shalt.err (!%p1137_p4)
}
 0x117   : > { %s1141_s5 = scalar_lea.hbm %s1505_s18, 128  ;;  %s1145_s28 = scalar_lea.hbm %s1559_s3, 256 }
 0x118   : > { %p1142_p6 = scmp.ne.s32.totalorder %s1505_s18, %s1141_s5  ;;  %p1146_p10 = scmp.lt.u32.totalorder %s1505_s18, %s1559_s3 }
 0x119   : > { %p1147_p12 = scmp.lt.u32.totalorder %s1145_s28, %s1141_s5  ;;  %p1149_p3 = scmp.lt.u32.totalorder %s1141_s5, %s1505_s18 }
 0x11a   : > { %p1143_p8 = pnand %p1142_p6, %p1579_p5 }
 0x11b   : > { %p1148_p1 = por %p1147_p12, %p1146_p10 }
 0x11c   : > { %p1144_p9 = pneg %p1143_p8 }
 0x11d   : > { %p1150_p7 = por %p1149_p3, %p1148_p1 }
 0x11f   : > { %p1151_p11 = pnand %p1150_p7, %p1144_p9 }
 0x121   : > { %1154 = shalt.err (!%p1151_p11)
}
 0x122   : > { %825 = dma.vmem_to_hbm [thread:$0]  (%p1579_p5), %s1507_s2, 128, %s1505_s18, %s464_s29  }
 0x123 PF: > { %p837_p13 = scmp.ge.s32.totalorder %s1227_s27, 2  ;;  %s490_s8 = sand.u32 1, %s1207_s22  }
 0x124   : > { %p1580_p0 = scmp.ne.s32.totalorder %s1571_s6, 0  ;;  %s491_s11 = scalar_lea.sflag [#allocation8], %s490_s8 }
 0x126   : > { %p832_p2 = pnand %p837_p13, %p1580_p0 }
 0x128   : > { %1202 = dma.done.wait (!%p832_p2), %s491_s11, 128  }
 0x129   : > { %1204 = vsyncadd (!%p832_p2), %s491_s11, 4294967168  ;;  %s21_s27 = sadd.s32 1, %s1227_s27   ;;  %s1581_s25 = sld [smem:[#allocation55_spill]] }
 0x12a   : > { %p18_p4 = scmp.ge.s32.totalorder %s21_s27, 4   ;;  %s1582_s26 = sld [smem:[#allocation56_spill]] }
 0x12b   : > { %s1583_s22 = smov %s1211_s23  ;;  %s1584_s23 = smov %s1215_s24 }
 0x12c   : > { %s1585_s24 = smov %s1326_s7  ;;  %20 = sbr.rel (!%p18_p4) target bundleno = 17 (0x11), region = 204 }
 0x133   :  { %496 = vsyncpa [#allocation7], 1 }
 0x134   :  { %498 = vsyncpa [#allocation7 + $0x1], 1 }
 0x135   :  { %499 = vsyncpa [#allocation8], 1 }
 0x136   :  { %501 = vsyncpa [#allocation8 + $0x1], 1 }
 0x137   :  { %502 = vsyncmov [#allocation3] }
 0x13a   :  { %s503_s4 = vpop.sfrf %502 }
 0x13b   :  { %p805_p5 = scmp.ne.s32.totalorder %s503_s4, 0 }
 0x13d   :  { %507 = shalt.err (%p805_p5)  }
 0x13e   :  { %509 = vsyncmov [#allocation3 + $0x1] }
 0x141   :  { %s510_s6 = vpop.sfrf %509 }
 0x142   :  { %p806_p6 = scmp.ne.s32.totalorder %s510_s6, 0 }
 0x144   :  { %514 = shalt.err (%p806_p6)  }
 0x145   :  { %516 = vsyncmov [#allocation3 + $0x2] }
 0x148   :  { %s517_s7 = vpop.sfrf %516 }
 0x149   :  { %p807_p8 = scmp.ne.s32.totalorder %s517_s7, 0 }
 0x14b   :  { %521 = shalt.err (%p807_p8)  }
 0x14c   :  { %523 = vsyncmov [#allocation3 + $0x3] }
 0x14f   :  { %s524_s13 = vpop.sfrf %523 }
 0x150   :  { %p808_p9 = scmp.ne.s32.totalorder %s524_s13, 0 }
 0x152   :  { %528 = shalt.err (%p808_p9)  }
 0x153   :  { %530 = vsyncmov [#allocation3 + $0x4] }
 0x156   :  { %s531_s1 = vpop.sfrf %530 }
 0x157   :  { %p809_p10 = scmp.ne.s32.totalorder %s531_s1, 0 }
 0x159   :  { %535 = shalt.err (%p809_p10)  }
 0x15a   :  { %537 = vsyncmov [#allocation3 + $0x5] }
 0x15d   :  { %s538_s3 = vpop.sfrf %537 }
 0x15e   :  { %p810_p12 = scmp.ne.s32.totalorder %s538_s3, 0 }
 0x160   :  { %542 = shalt.err (%p810_p12)  }
 0x161   :  { %544 = vsyncmov [#allocation3 + $0x6] }
 0x164   :  { %s545_s22 = vpop.sfrf %544 }
 0x165   :  { %p811_p1 = scmp.ne.s32.totalorder %s545_s22, 0 }
 0x167   :  { %549 = shalt.err (%p811_p1)  }
 0x168   :  { %551 = vsyncmov [#allocation3 + $0x7] }
 0x16b   :  { %s552_s23 = vpop.sfrf %551 }
 0x16c   :  { %p812_p3 = scmp.ne.s32.totalorder %s552_s23, 0 }
 0x16e   :  { %556 = shalt.err (%p812_p3)  }
 0x16f   :  { %558 = vsyncmov [#allocation3 + $0x8] }
 0x172   :  { %s559_s24 = vpop.sfrf %558 }
 0x173   :  { %p813_p7 = scmp.ne.s32.totalorder %s559_s24, 0 }
 0x175   :  { %563 = shalt.err (%p813_p7)  }
 0x176   :  { %565 = vsyncmov [#allocation3 + $0x9] }
 0x179   :  { %s566_s27 = vpop.sfrf %565 }
 0x17a   :  { %p814_p11 = scmp.ne.s32.totalorder %s566_s27, 0 }
 0x17c   :  { %570 = shalt.err (%p814_p11)  }
 0x17d   :  { %572 = vsyncmov [#allocation3 + $0xa] }
 0x180   :  { %s573_s15 = vpop.sfrf %572 }
 0x181   :  { %p815_p13 = scmp.ne.s32.totalorder %s573_s15, 0 }
 0x183   :  { %577 = shalt.err (%p815_p13)  }
 0x184   :  { %579 = vsyncmov [#allocation3 + $0xb] }
 0x187   :  { %s580_s26 = vpop.sfrf %579 }
 0x188   :  { %p816_p0 = scmp.ne.s32.totalorder %s580_s26, 0 }
 0x18a   :  { %584 = shalt.err (%p816_p0)  }
 0x18b   :  { %586 = vsyncmov [#allocation3 + $0xc] }
 0x18e   :  { %s587_s10 = vpop.sfrf %586 }
 0x18f   :  { %p817_p2 = scmp.ne.s32.totalorder %s587_s10, 0 }
 0x191   :  { %591 = shalt.err (%p817_p2)  }
 0x192   :  { %593 = vsyncmov [#allocation3 + $0xd] }
 0x195   :  { %s594_s2 = vpop.sfrf %593 }
 0x196   :  { %p818_p4 = scmp.ne.s32.totalorder %s594_s2, 0 }
 0x198   :  { %598 = shalt.err (%p818_p4)  }
 0x199   :  { %600 = vsyncmov [#allocation3 + $0xe] }
 0x19c   :  { %s601_s30 = vpop.sfrf %600 }
 0x19d   :  { %p819_p5 = scmp.ne.s32.totalorder %s601_s30, 0 }
 0x19f   :  { %605 = shalt.err (%p819_p5)  }
 0x1a0   :  { %607 = vsyncmov [#allocation3 + $0xf] }
 0x1a3   :  { %s608_s0 = vpop.sfrf %607 }
 0x1a4   :  { %p820_p6 = scmp.ne.s32.totalorder %s608_s0, 0 }
 0x1a6   :  { %612 = shalt.err (%p820_p6)  }

</bundles_post_ra>
